<compile_context>
chip_gen: v7x
topology: tpu7x:2x2x1
jax: 0.10.0
libtpu: 0.0.40
codegen_flags: <defaults>
</compile_context>

<pallas_src>
import jax
import jax.numpy as jnp
from jax.experimental import pallas as pl
from jax.experimental.pallas import tpu as pltpu


def _round_up(x, m):
    return ((x + m - 1) // m) * m


def _pick_tile_v(v_pad, h_pad, budget_bytes=8 * 1024 * 1024):
    """Largest vocab tile (multiple of 128, <=2048, divides v_pad) whose
    double-buffered bf16 W_out tile fits the budget (safe on v5e/v6e/v7x VMEM)."""
    best = 128
    t = 128
    while t <= min(v_pad, 2048):
        if v_pad % t == 0 and 2 * h_pad * t * 2 <= budget_bytes:
            best = t
        t += 128
    return best


def _decoder_step_kernel(x_ref, h_ref, wih_ref, whh_ref, bih_ref, bhh_ref,
                         wout_ref, bout_ref,            # streamed over vocab tiles
                         logp_ref, hnew_ref,            # outputs (resident)
                         hbf_sc, m_sc, l_sc):           # VMEM scratch
    j = pl.program_id(0)
    tile_v = wout_ref.shape[1]

    # ---- grid step 0: run the GRU cell once and init the online-LSE stats ----
    @pl.when(j == 0)
    def _():
        x = x_ref[...]                                   # (Bp, E)  bf16
        h = h_ref[...]                                   # (Bp, Hp) f32
        hp = h.shape[1]
        gi = jnp.dot(x, wih_ref[...],
                     preferred_element_type=jnp.float32) + bih_ref[...]
        gh = jnp.dot(h.astype(jnp.bfloat16), whh_ref[...],
                     preferred_element_type=jnp.float32) + bhh_ref[...]
        # PyTorch gate order r | z | n; each slice starts on a 128-lane boundary
        # because hp is a multiple of 128.
        r = jax.nn.sigmoid(gi[:, 0:hp] + gh[:, 0:hp])
        z = jax.nn.sigmoid(gi[:, hp:2 * hp] + gh[:, hp:2 * hp])
        n = jnp.tanh(gi[:, 2 * hp:3 * hp] + r * gh[:, 2 * hp:3 * hp])
        h_new = (1.0 - z) * n + z * h
        hnew_ref[...] = h_new
        hbf_sc[...] = h_new.astype(jnp.bfloat16)
        m_sc[...] = jnp.full(m_sc.shape, -jnp.inf, dtype=jnp.float32)
        l_sc[...] = jnp.zeros(l_sc.shape, dtype=jnp.float32)

    # ---- every step: output projection for this vocab tile (bf16 MXU, f32 acc) ----
    logits = jnp.dot(hbf_sc[...], wout_ref[...],
                     preferred_element_type=jnp.float32) + bout_ref[...]

    # online log-sum-exp statistics
    m_prev = m_sc[...]
    m_new = jnp.maximum(m_prev, jnp.max(logits, axis=-1, keepdims=True))
    l_sc[...] = l_sc[...] * jnp.exp(m_prev - m_new) + jnp.sum(
        jnp.exp(logits - m_new), axis=-1, keepdims=True)
    m_sc[...] = m_new

    # stage raw logits into the resident output slab (lane-aligned dynamic store)
    start = pl.multiple_of(j * tile_v, 128)
    logp_ref[:, pl.ds(start, tile_v)] = logits

    # ---- last step: turn staged logits into log-probabilities in place ----
    @pl.when(j == pl.num_programs(0) - 1)
    def _():
        lse = m_sc[...] + jnp.log(l_sc[...])             # (Bp, 1)
        logp_ref[...] = logp_ref[...] - lse


@jax.jit
def decoder_rnn_forward(inp, hidden, params):
    """Equivalent of DecoderRNN.forward(inp, hidden).

    inp    : int32 token indices, shape (B,)
    hidden : f32 (1, B, H)   (PyTorch GRU hidden convention)
    returns (log_probs (B, V), hidden_new (1, B, H))
    """
    emb = params["embedding"]                   # (V, E) f32, unpadded, frozen
    V, E = emb.shape
    B = inp.shape[0]
    H = hidden.shape[-1]
    Hp = params["w_hh_t"].shape[0]              # padded hidden (multiple of 128)
    Vp = params["w_out_t"].shape[1]             # padded vocab  (multiple of 128)
    Bp = _round_up(max(B, 8), 8)                # padded batch  (multiple of 8)
    tile_v = _pick_tile_v(Vp, Hp)
    n_tiles = Vp // tile_v

    # Embedding lookup + eval-mode dropout (identity) as plain JAX glue.
    # TODO(synk): training-mode dropout (p=0.05) would use pltpu.prng_seed +
    #             pltpu.stateful_bernoulli inside the kernel; eval-mode here.
    # TODO(synk): move the gather in-kernel via PrefetchScalarGridSpec + pl.Element
    #             once the decode loop is fused.
    x = jnp.take(emb, inp, axis=0)                                   # (B, E) f32
    x = jnp.pad(x, ((0, Bp - B), (0, 0))).astype(jnp.bfloat16)       # (Bp, E) bf16
    h0 = hidden.reshape(B, H).astype(jnp.float32)
    h0 = jnp.pad(h0, ((0, Bp - B), (0, Hp - H)))                     # (Bp, Hp) f32

    # Rough VMEM budget: resident operands + output slab + 2x streamed tiles.
    resident_bytes = (x.size * 2 + h0.size * 4
                      + params["w_ih_t"].size * 2 + params["w_hh_t"].size * 2
                      + params["b_ih"].size * 4 + params["b_hh"].size * 4
                      + Bp * Vp * 4 + Bp * Hp * 4 + Bp * Hp * 2 + 2 * Bp * 4)
    streamed_bytes = 2 * (Hp * tile_v * 2 + tile_v * 4)
    vmem_limit = int(min(max(2 * (resident_bytes + streamed_bytes), 8 << 20), 48 << 20))

    grid_spec = pltpu.PrefetchScalarGridSpec(
        num_scalar_prefetch=0,
        grid=(n_tiles,),
        in_specs=[
            pl.BlockSpec((Bp, E), lambda j: (0, 0)),           # x       (resident)
            pl.BlockSpec((Bp, Hp), lambda j: (0, 0)),          # h0      (resident)
            pl.BlockSpec((E, 3 * Hp), lambda j: (0, 0)),       # W_ih^T  (resident)
            pl.BlockSpec((Hp, 3 * Hp), lambda j: (0, 0)),      # W_hh^T  (resident)
            pl.BlockSpec((1, 3 * Hp), lambda j: (0, 0)),       # b_ih    (resident)
            pl.BlockSpec((1, 3 * Hp), lambda j: (0, 0)),       # b_hh    (resident)
            pl.BlockSpec((Hp, tile_v), lambda j: (0, j)),      # W_out^T (streamed)
            pl.BlockSpec((1, tile_v), lambda j: (0, j)),       # b_out   (streamed)
        ],
        out_specs=(
            pl.BlockSpec((Bp, Vp), lambda j: (0, 0)),          # log-probs (resident)
            pl.BlockSpec((Bp, Hp), lambda j: (0, 0)),          # h_new     (resident)
        ),
        scratch_shapes=[
            pltpu.VMEM((Bp, Hp), jnp.bfloat16),                # cached h_new (bf16)
            pltpu.VMEM((Bp, 1), jnp.float32),                  # running max m
            pltpu.VMEM((Bp, 1), jnp.float32),                  # running sum l
        ],
    )

    logp_pad, h_new_pad = pl.pallas_call(
        _decoder_step_kernel,
        out_shape=(
            jax.ShapeDtypeStruct((Bp, Vp), jnp.float32),
            jax.ShapeDtypeStruct((Bp, Hp), jnp.float32),
        ),
        grid_spec=grid_spec,
        compiler_params=pltpu.CompilerParams(
            dimension_semantics=("arbitrary",),   # vocab axis carries the online LSE
            vmem_limit_bytes=vmem_limit,
        ),
    )(x, h0,
      params["w_ih_t"], params["w_hh_t"],
      params["b_ih"], params["b_hh"],
      params["w_out_t"], params["b_out"])

    logp = logp_pad[:B, :V]
    h_new = h_new_pad[:B, :H].reshape(1, B, H)
    return logp, h_new


def init_raw_params(key, num_embeddings, embedding_dim, hidden_size):
    """PyTorch-layout parameters matching DecoderRNN.__init__."""
    V, E, H = num_embeddings, embedding_dim, hidden_size
    keys = jax.random.split(key, 7)
    k = 1.0 / jnp.sqrt(jnp.float32(H))
    uni = lambda kk, shape: jax.random.uniform(kk, shape, jnp.float32, -k, k)
    return {
        "embedding": jax.random.normal(keys[0], (V, E), jnp.float32),  # frozen table
        "w_ih": uni(keys[1], (3 * H, E)),     # weight_ih_l0, gate order r|z|n
        "w_hh": uni(keys[2], (3 * H, H)),     # weight_hh_l0
        "b_ih": uni(keys[3], (3 * H,)),
        "b_hh": uni(keys[4], (3 * H,)),
        "w_out": uni(keys[5], (V, H)),        # nn.Linear(H, V).weight
        "b_out": uni(keys[6], (V,)),
    }


def prepare_params(raw):
    """Pad / transpose / cast PyTorch-layout params into the kernel layout:
      H -> Hp (multiple of 128, per-gate padding so gate slices are lane-aligned)
      V -> Vp (multiple of 128; padded logits biased to -1e30 so they never win)
      matmul weights cast to bfloat16, biases kept float32."""
    emb = raw["embedding"]
    V, E = emb.shape
    H = raw["w_hh"].shape[1]
    Hp = _round_up(max(H, 128), 128)
    Vp = _round_up(V, 128)

    def pad2(a, rows, cols):
        return jnp.pad(a, ((0, rows - a.shape[0]), (0, cols - a.shape[1])))

    def pad_gates(w, cols_to):                 # (3H, C) -> (3*Hp, cols_to), per gate
        return jnp.concatenate(
            [pad2(w[g * H:(g + 1) * H], Hp, cols_to) for g in range(3)], axis=0)

    def pad_gate_bias(b):                      # (3H,) -> (1, 3*Hp)
        return jnp.concatenate(
            [jnp.pad(b[g * H:(g + 1) * H], (0, Hp - H)) for g in range(3)]
        ).reshape(1, 3 * Hp)

    w_ih_t = pad_gates(raw["w_ih"], E).T.astype(jnp.bfloat16)        # (E, 3*Hp)
    w_hh_t = pad_gates(raw["w_hh"], Hp).T.astype(jnp.bfloat16)       # (Hp, 3*Hp)
    b_ih = pad_gate_bias(raw["b_ih"]).astype(jnp.float32)
    b_hh = pad_gate_bias(raw["b_hh"]).astype(jnp.float32)
    w_out_t = pad2(raw["w_out"], Vp, Hp).T.astype(jnp.bfloat16)      # (Hp, Vp)
    b_out = jnp.pad(raw["b_out"], (0, Vp - V),
                    constant_values=-1e30).reshape(1, Vp).astype(jnp.float32)

    return {
        "embedding": emb.astype(jnp.float32),
        "w_ih_t": w_ih_t, "w_hh_t": w_hh_t,
        "b_ih": b_ih, "b_hh": b_hh,
        "w_out_t": w_out_t, "b_out": b_out,
    }


def _reference_forward(inp, hidden, raw):
    """Pure-JAX reference with the same bf16-input / f32-accumulate dot policy."""
    B = inp.shape[0]
    H = hidden.shape[-1]
    x = jnp.take(raw["embedding"], inp, axis=0).astype(jnp.bfloat16)
    h = hidden.reshape(B, H).astype(jnp.float32)
    gi = jnp.dot(x, raw["w_ih"].T.astype(jnp.bfloat16),
                 preferred_element_type=jnp.float32) + raw["b_ih"]
    gh = jnp.dot(h.astype(jnp.bfloat16), raw["w_hh"].T.astype(jnp.bfloat16),
                 preferred_element_type=jnp.float32) + raw["b_hh"]
    i_r, i_z, i_n = jnp.split(gi, 3, axis=1)
    h_r, h_z, h_n = jnp.split(gh, 3, axis=1)
    r = jax.nn.sigmoid(i_r + h_r)
    z = jax.nn.sigmoid(i_z + h_z)
    n = jnp.tanh(i_n + r * h_n)
    h_new = (1.0 - z) * n + z * h
    logits = jnp.dot(h_new.astype(jnp.bfloat16), raw["w_out"].T.astype(jnp.bfloat16),
                     preferred_element_type=jnp.float32) + raw["b_out"]
    return jax.nn.log_softmax(logits, axis=1), h_new.reshape(1, B, H)


if __name__ == "__main__":
    # Small shapes consistent with the module: vocab=128, embed=32, hidden=32, batch=4.
    V, E, H, B = 128, 32, 32, 4

    key = jax.random.PRNGKey(0)
    k_params, k_inp, k_hid = jax.random.split(key, 3)

    raw = init_raw_params(k_params, num_embeddings=V, embedding_dim=E, hidden_size=H)
    params = prepare_params(raw)
    inp = jax.random.randint(k_inp, (B,), 0, V, dtype=jnp.int32)
    hidden = jax.random.normal(k_hid, (1, B, H), jnp.float32)

    logp, h_new = decoder_rnn_forward(inp, hidden, params)
    jax.block_until_ready((logp, h_new))

    ref_logp, ref_h = _reference_forward(inp, hidden, raw)
    assert logp.shape == (B, V) and h_new.shape == (1, B, H)
    assert jnp.allclose(logp, ref_logp, atol=2e-3, rtol=2e-3), \
        float(jnp.max(jnp.abs(logp - ref_logp)))
    assert jnp.allclose(h_new, ref_h, atol=2e-3, rtol=2e-3), \
        float(jnp.max(jnp.abs(h_new - ref_h)))

    print("KERNEL_OK")
</pallas_src>

<mosaic_0001>
module attributes {stable_mosaic.version = 11 : i64} {
  func.func @_decoder_step_kernel(%arg0: i32, %arg1: memref<8x32xbf16, #tpu.memory_space<vmem>>, %arg2: memref<8x128xf32, #tpu.memory_space<vmem>>, %arg3: memref<32x384xbf16, #tpu.memory_space<vmem>>, %arg4: memref<128x384xbf16, #tpu.memory_space<vmem>>, %arg5: memref<1x384xf32, #tpu.memory_space<vmem>>, %arg6: memref<1x384xf32, #tpu.memory_space<vmem>>, %arg7: memref<128x128xbf16, #tpu.memory_space<vmem>>, %arg8: memref<1x128xf32, #tpu.memory_space<vmem>>, %arg9: memref<8x128xf32, #tpu.memory_space<vmem>>, %arg10: memref<8x128xf32, #tpu.memory_space<vmem>>, %arg11: memref<8x128xbf16, #tpu.memory_space<vmem>>, %arg12: memref<8x1xf32, #tpu.memory_space<vmem>>, %arg13: memref<8x1xf32, #tpu.memory_space<vmem>>) attributes {dimension_semantics = [#tpu.dimension_semantics<arbitrary>], iteration_bounds = array<i64: 1>, scalar_prefetch = 0 : i64, scratch_operands = 3 : i64, tpu.core_type = #tpu.core_type<tc>, window_params = [{pipeline_mode = #tpu.pipeline_mode<synchronous>, transform_indices = @transform_0, window_bounds = array<i64: 8, 32>}, {pipeline_mode = #tpu.pipeline_mode<synchronous>, transform_indices = @transform_1, window_bounds = array<i64: 8, 128>}, {pipeline_mode = #tpu.pipeline_mode<synchronous>, transform_indices = @transform_2, window_bounds = array<i64: 32, 384>}, {pipeline_mode = #tpu.pipeline_mode<synchronous>, transform_indices = @transform_3, window_bounds = array<i64: 128, 384>}, {pipeline_mode = #tpu.pipeline_mode<synchronous>, transform_indices = @transform_4, window_bounds = array<i64: 1, 384>}, {pipeline_mode = #tpu.pipeline_mode<synchronous>, transform_indices = @transform_5, window_bounds = array<i64: 1, 384>}, {transform_indices = @transform_6, window_bounds = array<i64: 128, 128>}, {transform_indices = @transform_7, window_bounds = array<i64: 1, 128>}, {pipeline_mode = #tpu.pipeline_mode<synchronous>, transform_indices = @transform_8, window_bounds = array<i64: 8, 128>}, {pipeline_mode = #tpu.pipeline_mode<synchronous>, transform_indices = @transform_9, window_bounds = array<i64: 8, 128>}]} {
    %c0_i32 = arith.constant 0 : i32
    %0 = arith.cmpi eq, %arg0, %c0_i32 : i32
    %1 = arith.extui %0 : i1 to i32
    %c0_i32_0 = arith.constant 0 : i32
    %2 = arith.cmpi ne, %1, %c0_i32_0 : i32
    scf.if %2 {
      %c0_19 = arith.constant 0 : index
      %c0_20 = arith.constant 0 : index
      %32 = vector.load %arg1[%c0_19, %c0_20] : memref<8x32xbf16, #tpu.memory_space<vmem>>, vector<8x32xbf16>
      %c0_21 = arith.constant 0 : index
      %c0_22 = arith.constant 0 : index
      %33 = vector.load %arg2[%c0_21, %c0_22] : memref<8x128xf32, #tpu.memory_space<vmem>>, vector<8x128xf32>
      %c0_23 = arith.constant 0 : index
      %c0_24 = arith.constant 0 : index
      %34 = vector.load %arg3[%c0_23, %c0_24] : memref<32x384xbf16, #tpu.memory_space<vmem>>, vector<32x384xbf16>
      %cst_25 = arith.constant dense<0.000000e+00> : vector<8x384xf32>
      %35 = tpu.matmul %32, %34, %cst_25 {dimension_numbers = #tpu.dot_dimension_numbers<[1], [0], [0], [1], [0, 0, 1, 1], [], []>} : vector<8x32xbf16>, vector<32x384xbf16>, vector<8x384xf32> -> vector<8x384xf32>
      %c0_26 = arith.constant 0 : index
      %c0_27 = arith.constant 0 : index
      %36 = vector.load %arg5[%c0_26, %c0_27] : memref<1x384xf32, #tpu.memory_space<vmem>>, vector<1x384xf32>
      %37 = vector.broadcast %36 : vector<1x384xf32> to vector<8x384xf32>
      %38 = arith.addf %35, %37 : vector<8x384xf32>
      %39 = arith.truncf %33 : vector<8x128xf32> to vector<8x128xbf16>
      %c0_28 = arith.constant 0 : index
      %c0_29 = arith.constant 0 : index
      %40 = vector.load %arg4[%c0_28, %c0_29] : memref<128x384xbf16, #tpu.memory_space<vmem>>, vector<128x384xbf16>
      %cst_30 = arith.constant dense<0.000000e+00> : vector<8x384xf32>
      %41 = tpu.matmul %39, %40, %cst_30 {dimension_numbers = #tpu.dot_dimension_numbers<[1], [0], [0], [1], [0, 0, 1, 1], [], []>} : vector<8x128xbf16>, vector<128x384xbf16>, vector<8x384xf32> -> vector<8x384xf32>
      %c0_31 = arith.constant 0 : index
      %c0_32 = arith.constant 0 : index
      %42 = vector.load %arg6[%c0_31, %c0_32] : memref<1x384xf32, #tpu.memory_space<vmem>>, vector<1x384xf32>
      %43 = vector.broadcast %42 : vector<1x384xf32> to vector<8x384xf32>
      %44 = arith.addf %41, %43 : vector<8x384xf32>
      %45 = vector.extract_strided_slice %38 {offsets = [0, 0], sizes = [8, 128], strides = [1, 1]} : vector<8x384xf32> to vector<8x128xf32>
      %46 = vector.extract_strided_slice %44 {offsets = [0, 0], sizes = [8, 128], strides = [1, 1]} : vector<8x384xf32> to vector<8x128xf32>
      %47 = arith.addf %45, %46 : vector<8x128xf32>
      %48 = arith.negf %47 : vector<8x128xf32>
      %49 = math.exp %48 : vector<8x128xf32>
      %cst_33 = arith.constant 1.000000e+00 : f32
      %50 = vector.broadcast %cst_33 : f32 to vector<8x128xf32>
      %51 = arith.addf %50, %49 : vector<8x128xf32>
      %52 = arith.divf %50, %51 : vector<8x128xf32>
      %53 = vector.extract_strided_slice %38 {offsets = [0, 128], sizes = [8, 128], strides = [1, 1]} : vector<8x384xf32> to vector<8x128xf32>
      %54 = vector.extract_strided_slice %44 {offsets = [0, 128], sizes = [8, 128], strides = [1, 1]} : vector<8x384xf32> to vector<8x128xf32>
      %55 = arith.addf %53, %54 : vector<8x128xf32>
      %56 = arith.negf %55 : vector<8x128xf32>
      %57 = math.exp %56 : vector<8x128xf32>
      %cst_34 = arith.constant 1.000000e+00 : f32
      %58 = vector.broadcast %cst_34 : f32 to vector<8x128xf32>
      %59 = arith.addf %58, %57 : vector<8x128xf32>
      %60 = arith.divf %58, %59 : vector<8x128xf32>
      %61 = vector.extract_strided_slice %38 {offsets = [0, 256], sizes = [8, 128], strides = [1, 1]} : vector<8x384xf32> to vector<8x128xf32>
      %62 = vector.extract_strided_slice %44 {offsets = [0, 256], sizes = [8, 128], strides = [1, 1]} : vector<8x384xf32> to vector<8x128xf32>
      %63 = arith.mulf %52, %62 : vector<8x128xf32>
      %64 = arith.addf %61, %63 : vector<8x128xf32>
      %65 = math.tanh %64 : vector<8x128xf32>
      %cst_35 = arith.constant 1.000000e+00 : f32
      %66 = vector.broadcast %cst_35 : f32 to vector<8x128xf32>
      %67 = arith.subf %66, %60 : vector<8x128xf32>
      %68 = arith.mulf %67, %65 : vector<8x128xf32>
      %69 = arith.mulf %60, %33 : vector<8x128xf32>
      %70 = arith.addf %68, %69 : vector<8x128xf32>
      %c0_36 = arith.constant 0 : index
      %c0_37 = arith.constant 0 : index
      %71 = vector.load %arg10[%c0_36, %c0_37] : memref<8x128xf32, #tpu.memory_space<vmem>>, vector<8x128xf32>
      tpu.vector_store %arg10[%c0_36, %c0_37], %70 {strides = array<i32>} : memref<8x128xf32, #tpu.memory_space<vmem>>, vector<8x128xf32>,
      %72 = arith.truncf %70 : vector<8x128xf32> to vector<8x128xbf16>
      %c0_38 = arith.constant 0 : index
      %c0_39 = arith.constant 0 : index
      %73 = vector.load %arg11[%c0_38, %c0_39] : memref<8x128xbf16, #tpu.memory_space<vmem>>, vector<8x128xbf16>
      tpu.vector_store %arg11[%c0_38, %c0_39], %72 {strides = array<i32>} : memref<8x128xbf16, #tpu.memory_space<vmem>>, vector<8x128xbf16>,
      %cst_40 = arith.constant 0xFF800000 : f32
      %74 = vector.broadcast %cst_40 : f32 to vector<8x1xf32>
      %c0_41 = arith.constant 0 : index
      %c0_42 = arith.constant 0 : index
      %75 = vector.load %arg12[%c0_41, %c0_42] : memref<8x1xf32, #tpu.memory_space<vmem>>, vector<8x1xf32>
      tpu.vector_store %arg12[%c0_41, %c0_42], %74 {strides = array<i32>} : memref<8x1xf32, #tpu.memory_space<vmem>>, vector<8x1xf32>,
      %cst_43 = arith.constant 0.000000e+00 : f32
      %76 = vector.broadcast %cst_43 : f32 to vector<8x1xf32>
      %c0_44 = arith.constant 0 : index
      %c0_45 = arith.constant 0 : index
      %77 = vector.load %arg13[%c0_44, %c0_45] : memref<8x1xf32, #tpu.memory_space<vmem>>, vector<8x1xf32>
      tpu.vector_store %arg13[%c0_44, %c0_45], %76 {strides = array<i32>} : memref<8x1xf32, #tpu.memory_space<vmem>>, vector<8x1xf32>,
    } else {
    }
    %c0 = arith.constant 0 : index
    %c0_1 = arith.constant 0 : index
    %3 = vector.load %arg11[%c0, %c0_1] : memref<8x128xbf16, #tpu.memory_space<vmem>>, vector<8x128xbf16>
    %c0_2 = arith.constant 0 : index
    %c0_3 = arith.constant 0 : index
    %4 = vector.load %arg7[%c0_2, %c0_3] : memref<128x128xbf16, #tpu.memory_space<vmem>>, vector<128x128xbf16>
    %cst = arith.constant dense<0.000000e+00> : vector<8x128xf32>
    %5 = tpu.matmul %3, %4, %cst {dimension_numbers = #tpu.dot_dimension_numbers<[1], [0], [0], [1], [0, 0, 1, 1], [], []>} : vector<8x128xbf16>, vector<128x128xbf16>, vector<8x128xf32> -> vector<8x128xf32>
    %c0_4 = arith.constant 0 : index
    %c0_5 = arith.constant 0 : index
    %6 = vector.load %arg8[%c0_4, %c0_5] : memref<1x128xf32, #tpu.memory_space<vmem>>, vector<1x128xf32>
    %7 = vector.broadcast %6 : vector<1x128xf32> to vector<8x128xf32>
    %8 = arith.addf %5, %7 : vector<8x128xf32>
    %c0_6 = arith.constant 0 : index
    %c0_7 = arith.constant 0 : index
    %9 = vector.load %arg12[%c0_6, %c0_7] : memref<8x1xf32, #tpu.memory_space<vmem>>, vector<8x1xf32>
    %cst_8 = arith.constant dense<0xFF800000> : vector<8xf32>
    %10 = vector.multi_reduction <maximumf>, %8, %cst_8 [1] : vector<8x128xf32> to vector<8xf32>
    %11 = vector.shape_cast %10 : vector<8xf32> to vector<8x1xf32>
    %12 = arith.maximumf %9, %11 : vector<8x1xf32>
    %c0_9 = arith.constant 0 : index
    %c0_10 = arith.constant 0 : index
    %13 = vector.load %arg13[%c0_9, %c0_10] : memref<8x1xf32, #tpu.memory_space<vmem>>, vector<8x1xf32>
    %14 = arith.subf %9, %12 : vector<8x1xf32>
    %15 = math.exp %14 : vector<8x1xf32>
    %16 = arith.mulf %13, %15 : vector<8x1xf32>
    %17 = vector.broadcast %12 : vector<8x1xf32> to vector<8x128xf32>
    %18 = arith.subf %8, %17 : vector<8x128xf32>
    %19 = math.exp %18 : vector<8x128xf32>
    %cst_11 = arith.constant dense<0.000000e+00> : vector<8xf32>
    %20 = vector.multi_reduction <add>, %19, %cst_11 [1] : vector<8x128xf32> to vector<8xf32>
    %21 = vector.shape_cast %20 : vector<8xf32> to vector<8x1xf32>
    %22 = arith.addf %16, %21 : vector<8x1xf32>
    %c0_12 = arith.constant 0 : index
    %c0_13 = arith.constant 0 : index
    %23 = vector.load %arg13[%c0_12, %c0_13] : memref<8x1xf32, #tpu.memory_space<vmem>>, vector<8x1xf32>
    tpu.vector_store %arg13[%c0_12, %c0_13], %22 {strides = array<i32>} : memref<8x1xf32, #tpu.memory_space<vmem>>, vector<8x1xf32>,
    %c0_14 = arith.constant 0 : index
    %c0_15 = arith.constant 0 : index
    %24 = vector.load %arg12[%c0_14, %c0_15] : memref<8x1xf32, #tpu.memory_space<vmem>>, vector<8x1xf32>
    tpu.vector_store %arg12[%c0_14, %c0_15], %12 {strides = array<i32>} : memref<8x1xf32, #tpu.memory_space<vmem>>, vector<8x1xf32>,
    %c128_i32 = arith.constant 128 : i32
    %25 = arith.muli %arg0, %c128_i32 : i32
    %26 = tpu.assume_multiple %25, 128 : i32
    %c0_16 = arith.constant 0 : index
    %27 = arith.index_cast %26 : i32 to index
    %28 = vector.load %arg9[%c0_16, %27] : memref<8x128xf32, #tpu.memory_space<vmem>>, vector<8x128xf32>
    tpu.vector_store %arg9[%c0_16, %27], %8 {strides = array<i32>} : memref<8x128xf32, #tpu.memory_space<vmem>>, vector<8x128xf32>,
    %c0_i32_17 = arith.constant 0 : i32
    %29 = arith.cmpi eq, %arg0, %c0_i32_17 : i32
    %30 = arith.extui %29 : i1 to i32
    %c0_i32_18 = arith.constant 0 : i32
    %31 = arith.cmpi ne, %30, %c0_i32_18 : i32
    scf.if %31 {
      %c0_19 = arith.constant 0 : index
      %c0_20 = arith.constant 0 : index
      %32 = vector.load %arg12[%c0_19, %c0_20] : memref<8x1xf32, #tpu.memory_space<vmem>>, vector<8x1xf32>
      %c0_21 = arith.constant 0 : index
      %c0_22 = arith.constant 0 : index
      %33 = vector.load %arg13[%c0_21, %c0_22] : memref<8x1xf32, #tpu.memory_space<vmem>>, vector<8x1xf32>
      %34 = math.log %33 : vector<8x1xf32>
      %35 = arith.addf %32, %34 : vector<8x1xf32>
      %c0_23 = arith.constant 0 : index
      %c0_24 = arith.constant 0 : index
      %36 = vector.load %arg9[%c0_23, %c0_24] : memref<8x128xf32, #tpu.memory_space<vmem>>, vector<8x128xf32>
      %37 = vector.broadcast %35 : vector<8x1xf32> to vector<8x128xf32>
      %38 = arith.subf %36, %37 : vector<8x128xf32>
      %c0_25 = arith.constant 0 : index
      %c0_26 = arith.constant 0 : index
      %39 = vector.load %arg9[%c0_25, %c0_26] : memref<8x128xf32, #tpu.memory_space<vmem>>, vector<8x128xf32>
      tpu.vector_store %arg9[%c0_25, %c0_26], %38 {strides = array<i32>} : memref<8x128xf32, #tpu.memory_space<vmem>>, vector<8x128xf32>,
    } else {
    }
    return
  }
  func.func @transform_0(%arg0: i32) -> (i32, i32) {
    %c0_i32 = arith.constant 0 : i32
    %c0_i32_0 = arith.constant 0 : i32
    %c0_i32_1 = arith.constant 0 : i32
    return %c0_i32, %c0_i32_0 : i32, i32
  }
  func.func @transform_1(%arg0: i32) -> (i32, i32) {
    %c0_i32 = arith.constant 0 : i32
    %c0_i32_0 = arith.constant 0 : i32
    %c0_i32_1 = arith.constant 0 : i32
    return %c0_i32, %c0_i32_0 : i32, i32
  }
  func.func @transform_2(%arg0: i32) -> (i32, i32) {
    %c0_i32 = arith.constant 0 : i32
    %c0_i32_0 = arith.constant 0 : i32
    %c0_i32_1 = arith.constant 0 : i32
    return %c0_i32, %c0_i32_0 : i32, i32
  }
  func.func @transform_3(%arg0: i32) -> (i32, i32) {
    %c0_i32 = arith.constant 0 : i32
    %c0_i32_0 = arith.constant 0 : i32
    %c0_i32_1 = arith.constant 0 : i32
    return %c0_i32, %c0_i32_0 : i32, i32
  }
  func.func @transform_4(%arg0: i32) -> (i32, i32) {
    %c0_i32 = arith.constant 0 : i32
    %c0_i32_0 = arith.constant 0 : i32
    %c0_i32_1 = arith.constant 0 : i32
    return %c0_i32, %c0_i32_0 : i32, i32
  }
  func.func @transform_5(%arg0: i32) -> (i32, i32) {
    %c0_i32 = arith.constant 0 : i32
    %c0_i32_0 = arith.constant 0 : i32
    %c0_i32_1 = arith.constant 0 : i32
    return %c0_i32, %c0_i32_0 : i32, i32
  }
  func.func @transform_6(%arg0: i32) -> (i32, i32) {
    %c0_i32 = arith.constant 0 : i32
    %c0_i32_0 = arith.constant 0 : i32
    return %c0_i32, %arg0 : i32, i32
  }
  func.func @transform_7(%arg0: i32) -> (i32, i32) {
    %c0_i32 = arith.constant 0 : i32
    %c0_i32_0 = arith.constant 0 : i32
    return %c0_i32, %arg0 : i32, i32
  }
  func.func @transform_8(%arg0: i32) -> (i32, i32) {
    %c0_i32 = arith.constant 0 : i32
    %c0_i32_0 = arith.constant 0 : i32
    %c0_i32_1 = arith.constant 0 : i32
    return %c0_i32, %c0_i32_0 : i32, i32
  }
  func.func @transform_9(%arg0: i32) -> (i32, i32) {
    %c0_i32 = arith.constant 0 : i32
    %c0_i32_0 = arith.constant 0 : i32
    %c0_i32_1 = arith.constant 0 : i32
    return %c0_i32, %c0_i32_0 : i32, i32
  }
}

</mosaic_0001>

<bundles_post_ra>
// kernel: decoder_rnn_forward.1
= control target key start
LH: loop header
LB: loop body
LE: loop exit
PB: predicated region body
PF: predicated region fallthrough
CT: control target
= control target key end

     0   :  { %15 = vsyncpa [#allocation6], 0  ;;  %s861_s30 = smov [#allocation5]   ;;  %s1029_s0 = inlined_call_operand.vmem [shape: bf16[8,32], index: 0, kind: input, shape index: {}]   ;;  %s1030_s1 = inlined_call_operand.vmem [shape: f32[8,128], index: 1, kind: input, shape index: {}]   ;;  %s1031_s2 = inlined_call_operand.vmem [shape: bf16[32,384], index: 2, kind: input, shape index: {}]   ;;  %s1032_s3 = inlined_call_operand.hbm [shape: bf16[128,384], index: 3, kind: input, shape index: {}]   ;;  %s1033_s4 = inlined_call_operand.vmem [shape: f32[1,384], index: 4, kind: input, shape index: {}]   ;;  %s1034_s5 = inlined_call_operand.vmem [shape: f32[1,384], index: 5, kind: input, shape index: {}]   ;;  %s1035_s6 = inlined_call_operand.vmem [shape: bf16[128,128], index: 6, kind: input, shape index: {}]   ;;  %s1036_s7 = inlined_call_operand.vmem [shape: f32[1,128], index: 7, kind: input, shape index: {}]   ;;  %s1037_s8 = inlined_call_operand.vmem [shape: f32[8,128], index: 8, kind: output, shape index: {0}]   ;;  %s1038_s9 = inlined_call_operand.vmem [shape: f32[8,128], index: 9, kind: output, shape index: {1}]  }
   0x1   :  { %s27_s10 = sshll.u32 %s861_s30, 4  ;;  %s837_s13 = scalar_lea.hbm %s1032_s3, 3072  ;;  %s28_s10 = int_to_ptr.vmem [resolvable:$true] %s27_s10 }
   0x2   :  { %p838_p0 = scmp.ne.s32.totalorder %s1032_s3, %s837_s13  ;;  %p841_p1 = scmp.lt.u32.totalorder %s837_s13, %s1032_s3 }
   0x4   :  { %p843_p2 = pnand %p841_p1, %p838_p0 }
   0x6   :  { %846 = shalt.err (!%p843_p2)
}
   0x7   :  { %s847_s18 = scalar_lea.vmem %s28_s10, 3072  ;;  %p852_p4 = scmp.lt.s32.totalorder %s28_s10, %s28_s10 }
   0x8   :  { %p848_p3 = scmp.ne.s32.totalorder %s28_s10, %s847_s18  ;;  %p853_p5 = scmp.lt.s32.totalorder %s847_s18, %s847_s18 }
   0xa   :  { %p854_p6 = por %p853_p5, %p852_p4 }
   0xc   :  { %p855_p7 = pnand %p854_p6, %p848_p3 }
   0xe   :  { %858 = shalt.err (!%p855_p7)
}
   0xf   :  { %s862_s19 = smov 192   ;;  %s863_s20 = smov 12  }
  0x10   :  { %33 = dma.hbm_to_vmem [thread:$0]  %s1032_s3, 3072, %s28_s10, [#allocation6], %s862_s19, %s862_s19, %s863_s20  }
  0x11   :  { %859 = dma.done.wait [#allocation6], 3072  }
  0x12   :  { %860 = vsyncadd [#allocation6], 4294964224  ;;  %v864_v0 = vmov 0   ;;  %v773_v1 = vld [vmem:[#allocation5 + $0x4] ss:$12 sps:$4 sm:$0xff]   ;;  %vm109_vm0 = vcmask 261120   ;;  %v62_v43 = vlaneseq }
  0x13   :  { %145 = vmatprep.mubr.bf16.mxu1 %v864_v0  ;;  %404 = vmatprep.mubr.bf16.mxu0 %v864_v0  ;;  %v775_v2 = vld [vmem:[#allocation5] ss:$12 sps:$4 sm:$0xff]   ;;  %v776_v3 = vld [vmem:[#allocation5 + $0x1c] ss:$12 sps:$4 sm:$0xff]   ;;  %v778_v4 = vld [vmem:[#allocation5 + $0x18] ss:$12 sps:$4 sm:$0xff]  }
  0x14   :  { %771 = vset.pattern.permute.xlu0 %v864_v0  ;;  %772 = vset.pattern.permute.xlu1 %v864_v0  ;;  %v779_v5 = vld [vmem:[%s1031_s2 + $0x4] ss:$12 sps:$4 sm:$0xff]   ;;  %v781_v6 = vld [vmem:[%s1031_s2] ss:$12 sps:$4 sm:$0xff]   ;;  %v782_v7 = vld [vmem:[#allocation5 + $0x34] ss:$12 sps:$4 sm:$0xff]  }
  0x15   :  { %372 = vmatprep.subr.bf16.mxu0 %v773_v1  ;;  %113 = vmatprep.subr.bf16.mxu1 %v779_v5  ;;  %v785_v8 = vld [vmem:[%s1031_s2 + $0x1c] ss:$12 sps:$4 sm:$0xff]   ;;  %v787_v9 = vld [vmem:[%s1031_s2 + $0x18] ss:$12 sps:$4 sm:$0xff]   ;;  %v788_v11 = vld [vmem:[#allocation5 + $0x4c] ss:$12 sps:$4 sm:$0xff]  }
  0x16   :  { %373 = vmatpush1.bf16.msra.mxu0 %v775_v2  ;;  %114 = vmatpush1.bf16.msra.mxu1 %v781_v6  ;;  %v784_v10 = vld [vmem:[#allocation5 + $0x30] ss:$12 sps:$4 sm:$0xff]   ;;  %v50_v12 = vld [vmem:[%s1029_s0] sm:$0xf]  ;;  %v791_v13 = vld [vmem:[%s1031_s2 + $0x8] ss:$12 sps:$4 sm:$0xff]  }
  0x17   :  { %374 = vmatprep.subr.bf16.mxu0 %v776_v3  ;;  %115 = vmatprep.subr.bf16.mxu1 %v785_v8  ;;  %v790_v14 = vld [vmem:[#allocation5 + $0x48] ss:$12 sps:$4 sm:$0xff]   ;;  %v865_v15 = vmov 0.0   ;;  %v792_v16 = vld [vmem:[#allocation5 + $0x64] ss:$12 sps:$4 sm:$0xff]   ;;  %vm866_vm1 = vmmov 0  }
  0x18   :  { %v795_v17 = vld [vmem:[%s1031_s2 + $0x20] ss:$12 sps:$4 sm:$0xff]   ;;  %v796_v19 = vld [vmem:[#allocation5 + $0x7c] ss:$12 sps:$4 sm:$0xff]   ;;  %v799_v22 = vld [vmem:[#allocation5 + $0x94] ss:$12 sps:$4 sm:$0xff]  }
  0x19   :  { %v794_v18 = vld [vmem:[#allocation5 + $0x60] ss:$12 sps:$4 sm:$0xff]   ;;  %v801_v20 = vld [vmem:[#allocation5 + $0x8] ss:$12 sps:$4 sm:$0xff]   ;;  %v798_v21 = vld [vmem:[#allocation5 + $0x78] ss:$12 sps:$4 sm:$0xff]  }
  0x1a   :  { %375 = vmatpush1.bf16.msra.mxu0 %v778_v4  ;;  %116 = vmatpush1.bf16.msra.mxu1 %v787_v9  ;;  %v802_v23 = vld [vmem:[#allocation5 + $0x90] ss:$12 sps:$4 sm:$0xff]   ;;  %v805_v24 = vld [vmem:[#allocation5 + $0x20] ss:$12 sps:$4 sm:$0xff]   ;;  %v807_v26 = vld [vmem:[#allocation5 + $0x38] ss:$12 sps:$4 sm:$0xff]  }
  0x1b   :  { %376 = vmatprep.subr.bf16.mxu0 %v782_v7  ;;  %710 = vmatprep.subr.bf16.mxu1 %v865_v15  ;;  %v803_v25 = vld [vmem:[#allocation5 + $0xac] ss:$12 sps:$4 sm:$0xff]   ;;  %v806_v27 = vld [vmem:[#allocation5 + $0xa8] ss:$12 sps:$4 sm:$0xff]   ;;  %v808_v30 = vld [vmem:[#allocation5 + $0x50] ss:$12 sps:$4 sm:$0xff]  }
  0x1c   :  { %v964_v28 = vld [vmem:[%s1030_s1] sm:$0xff]  ;;  %v809_v31 = vld [vmem:[#allocation5 + $0x68] ss:$12 sps:$4 sm:$0xff]   ;;  %v811_v33 = vld [vmem:[#allocation5 + $0x98] ss:$12 sps:$4 sm:$0xff]   ;;  %v63_v48 = vshrl.u32 %v62_v43, 7 }
  0x1d   :  { %652 = vmatmul.mubr.msk.bf16.vlgmr.msra.gmra.mrb[0].mxu1 %vm109_vm0, %v50_v12  ;;  %v194_v29 = vpack.c.bf16 %v964_v28, %v964_v28  ;;  %v810_v32 = vld [vmem:[#allocation5 + $0x80] ss:$12 sps:$4 sm:$0xff]   ;;  %v812_v34 = vld [vmem:[#allocation5 + $0xb0] ss:$12 sps:$4 sm:$0xff]   ;;  %v814_v36 = vld [vmem:[%s1035_s6 + $0x8] sm:$0xff]   ;;  %vm477_vm2 = vcmask 7168  }
  0x1e   :  { %377 = vmatpush1.bf16.msra.mxu0 %v784_v10  ;;  %711 = vmatpush3.bf16.msra.mxu1 %v791_v13  ;;  %v813_v35 = vld [vmem:[%s1035_s6] sm:$0xff]   ;;  %v815_v37 = vld [vmem:[%s1035_s6 + $0x10] sm:$0xff]   ;;  %v816_v38 = vld [vmem:[%s1035_s6 + $0x18] sm:$0xff]   ;;  %v64_v49 = vsub.s32 0, %v63_v48  ;;  %v68_v52 = vsub.s32 1, %v63_v48  ;;  %479 = vst.msk [vmem:[#allocation4] sm:$0xff] %vm477_vm2, %v865_v15 }
  0x1f   :  { %378 = vmatprep.subr.bf16.mxu0 %v788_v11  ;;  %714 = vmatprep.mubr.msk.bf16.mxu1 %vm866_vm1, %v865_v15  ;;  %v817_v39 = vld [vmem:[%s1035_s6 + $0x20] sm:$0xff]   ;;  %v818_v40 = vld [vmem:[%s1035_s6 + $0x28] sm:$0xff]   ;;  %v819_v41 = vld [vmem:[%s1035_s6 + $0x30] sm:$0xff]   ;;  %v72_v11 = vsub.s32 2, %v63_v48 }
  0x20   :  { %712 = vmatprep.subr.bf16.mxu1 %v865_v15  ;;  %v820_v42 = vld [vmem:[%s1035_s6 + $0x38] sm:$0xff]   ;;  %v60_v51 = vld [vmem:[%s1033_s4] sm:$0x7] }
  0x21   :  { %v65_v56 = vrot.slane %v60_v51, %v64_v49  ;;  %v69_v57 = vrot.slane %v60_v51, %v68_v52  ;;  %v227_v58 = vld [vmem:[%s1034_s5] sm:$0x7] }
  0x22   :  { %379 = vmatpush1.bf16.msra.mxu0 %v790_v14  ;;  %713 = vmatpush3.bf16.msra.mxu1 %v795_v17  ;;  %v232_v60 = vrot.slane %v227_v58, %v64_v49  ;;  %v236_v62 = vrot.slane %v227_v58, %v68_v52  ;;  %v240_v14 = vrot.slane %v227_v58, %v72_v11 }
  0x23   :  { %380 = vmatprep.subr.bf16.mxu0 %v792_v16  ;;  %718 = vmatprep.subr.bf16.mxu1 %v865_v15 }
  0x25   :  { %715 = vmatmul.mubr.msk.bf16.vlgmr.msra.gmra.mrb[4].mxu1 %vm109_vm0, %v50_v12 }
  0x26   :  { %381 = vmatpush1.bf16.msra.mxu0 %v794_v18  ;;  %719 = vmatpush3.bf16.msra.mxu1 %v801_v20 }
  0x27   :  { %382 = vmatprep.subr.bf16.mxu0 %v796_v19  ;;  %734 = vmatprep.mubr.msk.bf16.mxu1 %vm866_vm1, %v865_v15  ;;  %v73_v19 = vrot.slane %v60_v51, %v72_v11 }
  0x28   :  { %720 = vmatprep.subr.bf16.mxu1 %v865_v15 }
  0x2a   :  { %383 = vmatpush1.bf16.msra.mxu0 %v798_v21  ;;  %721 = vmatpush3.bf16.msra.mxu1 %v805_v24 }
  0x2b   :  { %384 = vmatprep.subr.bf16.mxu0 %v799_v22  ;;  %722 = vmatprep.subr.bf16.mxu1 %v865_v15 }
  0x2e   :  { %385 = vmatpush1.bf16.msra.mxu0 %v802_v23  ;;  %723 = vmatpush3.bf16.msra.mxu1 %v807_v26 }
  0x2f   :  { %386 = vmatprep.subr.bf16.mxu0 %v803_v25  ;;  %724 = vmatprep.subr.bf16.mxu1 %v865_v15 }
  0x32   :  { %387 = vmatpush1.bf16.msra.mxu0 %v806_v27  ;;  %725 = vmatpush3.bf16.msra.mxu1 %v808_v30 }
  0x33   :  { %738 = vmatprep.subr.bf16.mxu0 %v865_v15  ;;  %726 = vmatprep.subr.bf16.mxu1 %v865_v15 }
  0x35   :  { %405 = vmatmul.mubr.bf16.vlgmr.msra.gmra.mrb[0].mxu0 %v194_v29 }
  0x36   :  { %754 = vmatprep.mubr.msk.bf16.mxu0 %vm866_vm1, %v865_v15  ;;  %727 = vmatpush3.bf16.msra.mxu1 %v809_v31 }
  0x37   :  { %728 = vmatprep.subr.bf16.mxu1 %v865_v15  ;;  %739 = vmatpush3.bf16.msra.mxu0 %v813_v35  ;;  %v867_v35 = vmov -inf  }
  0x38   :  { %740 = vmatprep.subr.bf16.mxu0 %v865_v15  ;;  %478 = vst.msk [vmem:[#allocation3] sm:$0xff] %vm477_vm2, %v867_v35 }
  0x3a   :  { %729 = vmatpush3.bf16.msra.mxu1 %v810_v32 }
  0x3b   :  { %730 = vmatprep.subr.bf16.mxu1 %v865_v15  ;;  %741 = vmatpush3.bf16.msra.mxu0 %v814_v36 }
  0x3c   :  { %742 = vmatprep.subr.bf16.mxu0 %v865_v15 }
  0x3e   :  { %731 = vmatpush3.bf16.msra.mxu1 %v811_v33 }
  0x3f   :  { %732 = vmatprep.subr.bf16.mxu1 %v865_v15  ;;  %743 = vmatpush3.bf16.msra.mxu0 %v815_v37 }
  0x40   :  { %744 = vmatprep.subr.bf16.mxu0 %v865_v15 }
  0x42   :  { %733 = vmatpush3.bf16.msra.mxu1 %v812_v34 }
  0x43   :  { %745 = vmatpush3.bf16.msra.mxu0 %v816_v38 }
  0x44   :  { %746 = vmatprep.subr.bf16.mxu0 %v865_v15 }
  0x45   :  { %735 = vmatmul.mubr.bf16.vlgmr.msra.gmra.mrb[8].mxu1 %v194_v29 }
  0x47   :  { %747 = vmatpush3.bf16.msra.mxu0 %v817_v39 }
  0x48   :  { %748 = vmatprep.subr.bf16.mxu0 %v865_v15 }
  0x4b   :  { %749 = vmatpush3.bf16.msra.mxu0 %v818_v40 }
  0x4c   :  { %750 = vmatprep.subr.bf16.mxu0 %v865_v15 }
  0x4f   :  { %751 = vmatpush3.bf16.msra.mxu0 %v819_v41  ;;  %v592_v41 = vld [vmem:[#allocation3] sm:$0xff] }
  0x50   :  { %752 = vmatprep.subr.bf16.mxu0 %v865_v15 }
  0x53   :  { %753 = vmatpush3.bf16.msra.mxu0 %v820_v42 }
  0xf0   :  { %v147_v44 = vpop.f32.mrb[0].mxu1 }
  0xf1   :  { %v149_v45 = vpop.f32.mrb[1].mxu1  ;;  %v148_v59 = vadd.f32 %v147_v44, %v65_v56 }
  0xf2   :  { %v151_v46 = vpop.f32.mrb[2].mxu1  ;;  %v150_v61 = vadd.f32 %v149_v45, %v69_v57 }
  0xf3   :  { %v152_v47 = vpop.f32.mrb[3].mxu1  ;;  %v759_v63 = vadd.f32 %v232_v60, %v148_v59 }
  0xf4   :  { %v762_v1 = vadd.f32 %v236_v62, %v150_v61 }
  0xf8   :  { %v188_v50 = vpop.f32.mrb[4].mxu1 }
  0xf9   :  { %v716_v53 = vpop.f32.mrb[5].mxu1  ;;  %v189_v23 = vadd.f32 %v188_v50, %v73_v19  ;;  %v596_v50 = vld [vmem:[#allocation4] sm:$0xff] }
  0xfa   :  { %v191_v54 = vpop.f32.mrb[6].mxu1 }
  0xfb   :  { %v717_v55 = vpop.f32.mrb[7].mxu1 }
 0x108   :  { %v406_v0 = vpop.f32.mrb[0].mxu0 }
 0x109   :  { %v760_v2 = vadd.f32 %v759_v63, %v406_v0  ;;  %v408_v3 = vpop.f32.mrb[1].mxu0 }
 0x10a   :  { %v763_v4 = vadd.f32 %v762_v1, %v408_v3  ;;  %v410_v5 = vpop.f32.mrb[2].mxu0 }
 0x10b   :  { %v678_v6 = vmul.f32 -1.442695, %v760_v2  ;;  %v411_v7 = vpop.f32.mrb[3].mxu0 }
 0x10c   :  { %v679_v8 = vmul.f32 -1.442695, %v763_v4 }
 0x10d   :  { %821 = vpow2.f32 %v678_v6 }
 0x10e   :  { %823 = vpow2.f32 %v679_v8 }
 0x117   :  { %v822_v9 = vpop.eup %821 }
 0x118   :  { %v457_v10 = vadd.f32 1.0, %v822_v9  ;;  %v447_v12 = vpop.f32.mrb[8].mxu1  ;;  %v824_v17 = vpop.eup %823 }
 0x119   :  { %v736_v13 = vpop.f32.mrb[9].mxu1  ;;  %v464_v20 = vadd.f32 1.0, %v824_v17  ;;  %v448_v21 = vadd.f32 %v447_v12, %v240_v14 }
 0x11a   :  { %825 = vrcp.f32 %v457_v10  ;;  %v450_v16 = vpop.f32.mrb[10].mxu1 }
 0x11b   :  { %v737_v18 = vpop.f32.mrb[11].mxu1  ;;  %827 = vrcp.f32 %v464_v20 }
 0x124   :  { %v826_v22 = vpop.eup %825 }
 0x125   :  { %v467_v24 = vmul.f32 %v826_v22, %v448_v21  ;;  %v828_v26 = vpop.eup %827 }
 0x126   :  { %v470_v27 = vsub.f32 1.0, %v828_v26  ;;  %v472_v30 = vmul.f32 %v828_v26, %v964_v28  ;;  %v680_v28 = vld [vmem:[%s1036_s7] ss:$0 sm:$0xff] }
 0x127   :  { %v468_v25 = vadd.f32 %v467_v24, %v189_v23 }
 0x129   :  { %829 = vtanh.f32 %v468_v25 }
 0x133   :  { %v830_v29 = vpop.eup %829 }
 0x134   :  { %v471_v31 = vmul.f32 %v830_v29, %v470_v27 }
 0x136   :  { %v473_v32 = vadd.f32 %v472_v30, %v471_v31 }
 0x138   :  { %474 = vst [vmem:[%s1038_s9] sm:$0xff] %v473_v32  ;;  %v475_v33 = vpack.c.bf16 %v473_v32, %v473_v32 }
 0x13a   :  { %476 = vst [vmem:[#allocation2] sm:$0xf] %v475_v33 }
 0x141   :  { %v480_v34 = vld [vmem:[#allocation2] sm:$0xf] }
 0x142   :  { %755 = vmatmul.mubr.bf16.vlgmr.msra.gmra.mrb[4].mxu0 %v480_v34 }
 0x215   :  { %v586_v36 = vpop.f32.mrb[4].mxu0 }
 0x216   :  { %v587_v37 = vadd.f32 %v680_v28, %v586_v36  ;;  %v756_v38 = vpop.f32.mrb[5].mxu0 }
 0x217   :  { %v589_v39 = vpop.f32.mrb[6].mxu0 }
 0x218   :  { %593 = vmax.xlane.f32.xlu0 %v587_v37  ;;  %v757_v40 = vpop.f32.mrb[7].mxu0 }
 0x2a5   :  { %v594_v42 = vpop.xlane.xlu0 %593 }
 0x2a6   :  { %v595_v43 = vmax.f32 %v592_v41, %v594_v42 }
 0x2a8   :  { %v597_v44 = vsub.f32 %v592_v41, %v595_v43  ;;  %614 = vst.msk [vmem:[#allocation3] sm:$0xff] %vm477_vm2, %v595_v43  ;;  %603 = vperm.xlu0 %771, %v595_v43  }
 0x2aa   :  { %v598_v48 = vmul.f32 1.442695, %v597_v44 }
 0x2af   :  { %v623_v57 = vld [vmem:[#allocation3] sm:$0xff] }
 0x327   :  { %v604_v45 = vpop.permute.xlu0 %603 }
 0x328   :  { %v606_v46 = vsub.f32 %v587_v37, %v604_v45 }
 0x32a   :  { %v607_v15 = vmul.f32 1.442695, %v606_v46 }
 0x32c   :  { %831 = vpow2.f32 %v607_v15 }
 0x32d   :  { %833 = vpow2.f32 %v598_v48 }
 0x336   :  { %v832_v47 = vpop.eup %831 }
 0x337   :  { %609 = vadd.xlane.f32.xlu1 %v832_v47  ;;  %v834_v49 = vpop.eup %833 }
 0x338   :  { %v600_v51 = vmul.f32 %v834_v49, %v596_v50 }
 0x3c4   :  { %v610_v52 = vpop.xlane.xlu1 %609 }
 0x3c5   :  { %v611_v53 = vadd.f32 %v610_v52, %v600_v51 }
 0x3c7   :  { %613 = vst.msk [vmem:[#allocation4] sm:$0xff] %vm477_vm2, %v611_v53 }
 0x3ce   :  { %v624_v54 = vld [vmem:[#allocation4] sm:$0xff] }
 0x3cf   :  { %835 = vlog2.f32 %v624_v54 }
 0x3d9   :  { %v836_v55 = vpop.eup %835 }
 0x3da   :  { %v626_v56 = vmul.f32 0.6931472, %v836_v55 }
 0x3dc   :  { %v627_v58 = vadd.f32 %v626_v56, %v623_v57 }
 0x3de   :  { %631 = vperm.xlu1 %772, %v627_v58  }
 0x45d   :  { %v632_v59 = vpop.permute.xlu1 %631 }
 0x45e   :  { %v634_v60 = vsub.f32 %v587_v37, %v632_v59 }
 0x460   :  { %635 = vst [vmem:[%s1037_s8] sm:$0xff] %v634_v60 }
 0x461   :  { %644 = vsyncpa [#allocation6], 1 }

</bundles_post_ra>
